<compile_context>
chip_gen: v6e
topology: v6e:2x2x1
jax: 0.10.0
libtpu: 0.0.40
codegen_flags: <defaults>
</compile_context>

<pallas_src>
import functools

import jax
import jax.numpy as jnp
from jax import lax
from jax.experimental import pallas as pl
from jax.experimental.pallas import tpu as pltpu


# ----------------------------------------------------------------------------
# Kernel
# ----------------------------------------------------------------------------
def attention_kernel(wr_ref, q_ref, k_ref, v_ref, wq_ref, bq_ref, wk_ref, bk_ref,
                     o_ref, qh_sc, m_sc, l_sc, acc_sc, *,
                     use_residual, concat, matmul_dtype, approx_reciprocal):
    """Grid = (batch_blocks [parallel], kv_blocks [arbitrary, last])."""
    kv = pl.program_id(1)
    n_kv = pl.num_programs(1)

    bblk, tq, d = q_ref.shape
    tk = k_ref.shape[1]
    h = wq_ref.shape[1]

    # --- per batch-block init (first kv step): Q projection + online-softmax state
    @pl.when(kv == 0)
    def _init():
        # Fold batch into the M dimension of the projection matmul.
        q2 = q_ref[...].reshape(bblk * tq, d).astype(matmul_dtype)
        qh = jnp.dot(q2, wq_ref[...], preferred_element_type=jnp.float32)
        qh = qh + bq_ref[...]                      # temperature already folded in
        qh_sc[...] = qh.reshape(bblk, tq, h)
        m_sc[...] = jnp.full(m_sc.shape, -jnp.inf, dtype=m_sc.dtype)
        l_sc[...] = jnp.zeros(l_sc.shape, dtype=l_sc.dtype)
        acc_sc[...] = jnp.zeros(acc_sc.shape, dtype=acc_sc.dtype)

    # --- K projection for this kv block (batch folded into M rows).
    k2 = k_ref[...].reshape(bblk * tk, d).astype(matmul_dtype)
    kh = jnp.dot(k2, wk_ref[...], preferred_element_type=jnp.float32)
    kh = (kh + bk_ref[...]).reshape(bblk, tk, h)

    # --- scores: batched contraction over H, no materialized kh.T
    s = lax.dot_general(
        qh_sc[...].astype(matmul_dtype), kh.astype(matmul_dtype),
        dimension_numbers=(((2,), (2,)), ((0,), (0,))),
        preferred_element_type=jnp.float32)        # [bblk, tq, tk]

    # --- online softmax update (f32)
    m_prev = m_sc[...]
    m_new = jnp.maximum(m_prev, jnp.max(s, axis=-1, keepdims=True))
    alpha = jnp.exp(m_prev - m_new)
    p = jnp.exp(s - m_new)
    l_sc[...] = alpha * l_sc[...] + jnp.sum(p, axis=-1, keepdims=True)

    pv = lax.dot_general(
        p.astype(matmul_dtype), v_ref[...].astype(matmul_dtype),
        dimension_numbers=(((2,), (1,)), ((0,), (0,))),
        preferred_element_type=jnp.float32)        # [bblk, tq, d]
    acc_sc[...] = alpha * acc_sc[...] + pv
    m_sc[...] = m_new

    # --- finalize on the last kv step
    @pl.when(kv == n_kv - 1)
    def _finalize():
        inv_l = pl.reciprocal(l_sc[...], approx=approx_reciprocal)   # EUP
        res = acc_sc[...] * inv_l
        if use_residual:
            res = res + wr_ref[0] * q_ref[...].astype(jnp.float32)
        if concat:
            # ELU(alpha=1)
            res = jnp.where(res > 0.0, res, jnp.exp(res) - 1.0)
        o_ref[...] = res.astype(o_ref.dtype)


# ----------------------------------------------------------------------------
# Tiling heuristics
# ----------------------------------------------------------------------------
def _pick_batch_block(B, Tq, row_target=128):
    """Largest divisor of B whose folded row count (bblk*Tq) fits the MXU-fill
    target, while keeping >=2 parallel grid steps when possible (v7x megacore)."""
    best = 1
    for bb in range(1, B + 1):
        if B % bb == 0 and bb * Tq <= max(Tq, row_target):
            best = bb
    while best > 1 and B // best < 2:
        best = max(d for d in range(1, best) if B % d == 0)
    return best


def _pick_kv_block(T, target=512):
    """KV block length: full T if small, else a multiple-of-8 divisor <= target.
    Bounds VMEM to O(tq*tk + tq*D) regardless of T (fits v7x's 64 MiB VMEM)."""
    if T <= target:
        return T
    for tk in range(target - (target % 8), 7, -8):
        if T % tk == 0:
            return tk
    return T


# ----------------------------------------------------------------------------
# Wrapper
# ----------------------------------------------------------------------------
def attention_forward(q, k, v, params, *, use_residual=True, concat=False,
                      approx_reciprocal=True, kv_block_target=512,
                      row_target=128):
    """params must come from prepare_params() (scale folded, matmul dtype set)."""
    B, Tq, D = q.shape
    _, T, _ = k.shape
    H = params["wq_t"].shape[1]
    matmul_dtype = params["wq_t"].dtype

    bblk = _pick_batch_block(B, Tq, row_target)
    tk = _pick_kv_block(T, kv_block_target)
    nb = B // bblk
    nkv = T // tk

    kernel = functools.partial(
        attention_kernel,
        use_residual=use_residual,
        concat=concat,
        matmul_dtype=matmul_dtype,
        approx_reciprocal=approx_reciprocal,
    )

    return pl.pallas_call(
        kernel,
        out_shape=jax.ShapeDtypeStruct((B, Tq, D), q.dtype),
        grid=(nb, nkv),
        in_specs=[
            pl.BlockSpec(memory_space=pltpu.MemorySpace.SMEM),          # Wr scalar
            pl.BlockSpec((bblk, Tq, D), lambda b, kv: (b, 0, 0)),       # q (kv-resident)
            pl.BlockSpec((bblk, tk, D), lambda b, kv: (b, kv, 0)),      # k (streamed)
            pl.BlockSpec((bblk, tk, D), lambda b, kv: (b, kv, 0)),      # v (streamed)
            pl.BlockSpec((D, H), lambda b, kv: (0, 0)),                 # Wq^T (pre-scaled)
            pl.BlockSpec((1, H), lambda b, kv: (0, 0)),                 # bq   (pre-scaled)
            pl.BlockSpec((D, H), lambda b, kv: (0, 0)),                 # Wk^T
            pl.BlockSpec((1, H), lambda b, kv: (0, 0)),                 # bk
        ],
        out_specs=pl.BlockSpec((bblk, Tq, D), lambda b, kv: (b, 0, 0)),
        scratch_shapes=[
            pltpu.VMEM((bblk, Tq, H), jnp.float32),   # qh (computed once per b-block)
            pltpu.VMEM((bblk, Tq, 1), jnp.float32),   # m  (running max)
            pltpu.VMEM((bblk, Tq, 1), jnp.float32),   # l  (running denom)
            pltpu.VMEM((bblk, Tq, D), jnp.float32),   # acc
        ],
        compiler_params=pltpu.CompilerParams(
            dimension_semantics=("parallel", "arbitrary")),
    )(params["wr"], q, k, v, params["wq_t"], params["bq"],
      params["wk_t"], params["bk"])


# ----------------------------------------------------------------------------
# Parameters
# ----------------------------------------------------------------------------
def init_params(key, in_features, qk_hidden):
    """Deterministic parameter init matching the PyTorch module's __init__."""
    kq_w, kq_b, kk_w, kk_b = jax.random.split(key, 4)
    gain = 1.414
    bound_w = gain * (6.0 / (in_features + qk_hidden)) ** 0.5
    wq = jax.random.uniform(kq_w, (qk_hidden, in_features), jnp.float32,
                            minval=-bound_w, maxval=bound_w)
    wk = jax.random.uniform(kk_w, (qk_hidden, in_features), jnp.float32,
                            minval=-bound_w, maxval=bound_w)
    bound_b = 1.0 / (in_features ** 0.5)
    bq = jax.random.uniform(kq_b, (qk_hidden,), jnp.float32,
                            minval=-bound_b, maxval=bound_b)
    bk = jax.random.uniform(kk_b, (qk_hidden,), jnp.float32,
                            minval=-bound_b, maxval=bound_b)
    wr = jnp.ones((1,), jnp.float32)
    return {
        "wq_t": wq.T,                       # [D, H]
        "bq": bq.reshape(1, qk_hidden),     # [1, H]
        "wk_t": wk.T,                       # [D, H]
        "bk": bk.reshape(1, qk_hidden),     # [1, H]
        "wr": wr,                           # [1]
    }


def prepare_params(params, *, qk_hidden, matmul_dtype=jnp.float32):
    """One-time transform: fold 1/sqrt(H) into Wq/bq, cast MXU operands."""
    inv_temp = 1.0 / (float(qk_hidden) ** 0.5)
    return {
        "wq_t": (params["wq_t"] * inv_temp).astype(matmul_dtype),
        "bq": (params["bq"] * inv_temp).astype(jnp.float32),
        "wk_t": params["wk_t"].astype(matmul_dtype),
        "bk": params["bk"].astype(jnp.float32),
        "wr": params["wr"].astype(jnp.float32),
    }


# ----------------------------------------------------------------------------
# Pure-JAX reference (PyTorch semantics)
# ----------------------------------------------------------------------------
def reference_forward(q, k, v, params, *, qk_hidden, use_residual=True, concat=False):
    temperature = float(qk_hidden) ** 0.5
    r = params["wr"][0] * q
    qh = q @ params["wq_t"] + params["bq"]
    kh = k @ params["wk_t"] + params["bk"]
    attn = jnp.einsum("bqh,bkh->bqk", qh / temperature, kh)
    attn = jax.nn.softmax(attn, axis=-1)
    res = jnp.einsum("bqk,bkd->bqd", attn, v)
    if use_residual:
        res = res + r
    if concat:
        res = jnp.where(res > 0, res, jnp.exp(res) - 1.0)
    return res


# ----------------------------------------------------------------------------
# Test
# ----------------------------------------------------------------------------
if __name__ == "__main__":
    # Small shapes consistent with the module: features D = C*H*W = 2*4*4 = 32.
    B, T, D = 2, 8, 32
    QK_HIDDEN = 64

    key = jax.random.PRNGKey(0)
    k_param, k_q, k_k, k_v = jax.random.split(key, 4)

    raw_params = init_params(k_param, in_features=D, qk_hidden=QK_HIDDEN)

    q = jax.random.normal(k_q, (B, T, D), jnp.float32)
    k = jax.random.normal(k_k, (B, T, D), jnp.float32)
    v = jax.random.normal(k_v, (B, T, D), jnp.float32)

    ref = reference_forward(q, k, v, raw_params, qk_hidden=QK_HIDDEN)

    # 1) f32 MXU operands, exact reciprocal -> tight check vs reference.
    params_f32 = prepare_params(raw_params, qk_hidden=QK_HIDDEN,
                                matmul_dtype=jnp.float32)
    out_f32 = attention_forward(q, k, v, params_f32, approx_reciprocal=False)
    out_f32 = jax.block_until_ready(out_f32)
    assert out_f32.shape == (B, T, D)
    assert jnp.allclose(out_f32, ref, atol=2e-4, rtol=2e-4), (
        "f32 mismatch, max abs diff = %f" % float(jnp.max(jnp.abs(out_f32 - ref))))

    # 2) bf16 MXU operands (v6e/v7x-preferred), EUP approx reciprocal -> loose check.
    params_bf16 = prepare_params(raw_params, qk_hidden=QK_HIDDEN,
                                 matmul_dtype=jnp.bfloat16)
    out_bf16 = attention_forward(q, k, v, params_bf16, approx_reciprocal=True)
    out_bf16 = jax.block_until_ready(out_bf16)
    assert out_bf16.shape == (B, T, D)
    assert jnp.allclose(out_bf16, ref, atol=1e-1, rtol=1e-1), (
        "bf16 mismatch, max abs diff = %f" % float(jnp.max(jnp.abs(out_bf16 - ref))))

    print("KERNEL_OK")
</pallas_src>

<mosaic_0001>
module attributes {stable_mosaic.version = 11 : i64} {
  func.func @attention_kernel(%arg0: i32, %arg1: i32, %arg2: memref<1xf32, #tpu.memory_space<smem>>, %arg3: memref<1x8x32xf32, #tpu.memory_space<vmem>>, %arg4: memref<1x8x32xf32, #tpu.memory_space<vmem>>, %arg5: memref<1x8x32xf32, #tpu.memory_space<vmem>>, %arg6: memref<32x64xf32, #tpu.memory_space<vmem>>, %arg7: memref<1x64xf32, #tpu.memory_space<vmem>>, %arg8: memref<32x64xf32, #tpu.memory_space<vmem>>, %arg9: memref<1x64xf32, #tpu.memory_space<vmem>>, %arg10: memref<1x8x32xf32, #tpu.memory_space<vmem>>, %arg11: memref<1x8x64xf32, #tpu.memory_space<vmem>>, %arg12: memref<1x8x1xf32, #tpu.memory_space<vmem>>, %arg13: memref<1x8x1xf32, #tpu.memory_space<vmem>>, %arg14: memref<1x8x32xf32, #tpu.memory_space<vmem>>) attributes {dimension_semantics = [#tpu.dimension_semantics<parallel>, #tpu.dimension_semantics<arbitrary>], iteration_bounds = array<i64: 2, 1>, scalar_prefetch = 0 : i64, scratch_operands = 4 : i64, tpu.core_type = #tpu.core_type<tc>, window_params = [{transform_indices = @transform_0, window_bounds = array<i64: 1>}, {transform_indices = @transform_1, window_bounds = array<i64: 1, 8, 32>}, {transform_indices = @transform_2, window_bounds = array<i64: 1, 8, 32>}, {transform_indices = @transform_3, window_bounds = array<i64: 1, 8, 32>}, {pipeline_mode = #tpu.pipeline_mode<synchronous>, transform_indices = @transform_4, window_bounds = array<i64: 32, 64>}, {pipeline_mode = #tpu.pipeline_mode<synchronous>, transform_indices = @transform_5, window_bounds = array<i64: 1, 64>}, {pipeline_mode = #tpu.pipeline_mode<synchronous>, transform_indices = @transform_6, window_bounds = array<i64: 32, 64>}, {pipeline_mode = #tpu.pipeline_mode<synchronous>, transform_indices = @transform_7, window_bounds = array<i64: 1, 64>}, {transform_indices = @transform_8, window_bounds = array<i64: 1, 8, 32>}]} {
    %c0_i32 = arith.constant 0 : i32
    %0 = arith.cmpi eq, %arg1, %c0_i32 : i32
    %1 = arith.extui %0 : i1 to i32
    %c0_i32_0 = arith.constant 0 : i32
    %2 = arith.cmpi ne, %1, %c0_i32_0 : i32
    scf.if %2 {
      %c0_37 = arith.constant 0 : index
      %c0_38 = arith.constant 0 : index
      %c0_39 = arith.constant 0 : index
      %39 = vector.load %arg3[%c0_37, %c0_38, %c0_39] : memref<1x8x32xf32, #tpu.memory_space<vmem>>, vector<1x8x32xf32>
      %40 = vector.shape_cast %39 : vector<1x8x32xf32> to vector<8x32xf32>
      %c0_40 = arith.constant 0 : index
      %c0_41 = arith.constant 0 : index
      %41 = vector.load %arg6[%c0_40, %c0_41] : memref<32x64xf32, #tpu.memory_space<vmem>>, vector<32x64xf32>
      %cst_42 = arith.constant dense<0.000000e+00> : vector<8x64xf32>
      %42 = tpu.matmul %40, %41, %cst_42 {dimension_numbers = #tpu.dot_dimension_numbers<[1], [0], [0], [1], [0, 0, 1, 1], [], []>} : vector<8x32xf32>, vector<32x64xf32>, vector<8x64xf32> -> vector<8x64xf32>
      %c0_43 = arith.constant 0 : index
      %c0_44 = arith.constant 0 : index
      %43 = vector.load %arg7[%c0_43, %c0_44] : memref<1x64xf32, #tpu.memory_space<vmem>>, vector<1x64xf32>
      %44 = vector.broadcast %43 : vector<1x64xf32> to vector<8x64xf32>
      %45 = arith.addf %42, %44 : vector<8x64xf32>
      %46 = vector.shape_cast %45 : vector<8x64xf32> to vector<1x8x64xf32>
      %c0_45 = arith.constant 0 : index
      %c0_46 = arith.constant 0 : index
      %c0_47 = arith.constant 0 : index
      %47 = vector.load %arg11[%c0_45, %c0_46, %c0_47] : memref<1x8x64xf32, #tpu.memory_space<vmem>>, vector<1x8x64xf32>
      tpu.vector_store %arg11[%c0_45, %c0_46, %c0_47], %46 {strides = array<i32>} : memref<1x8x64xf32, #tpu.memory_space<vmem>>, vector<1x8x64xf32>,
      %cst_48 = arith.constant 0xFF800000 : f32
      %48 = vector.broadcast %cst_48 : f32 to vector<1x8x1xf32>
      %c0_49 = arith.constant 0 : index
      %c0_50 = arith.constant 0 : index
      %c0_51 = arith.constant 0 : index
      %49 = vector.load %arg12[%c0_49, %c0_50, %c0_51] : memref<1x8x1xf32, #tpu.memory_space<vmem>>, vector<1x8x1xf32>
      tpu.vector_store %arg12[%c0_49, %c0_50, %c0_51], %48 {strides = array<i32>} : memref<1x8x1xf32, #tpu.memory_space<vmem>>, vector<1x8x1xf32>,
      %cst_52 = arith.constant 0.000000e+00 : f32
      %50 = vector.broadcast %cst_52 : f32 to vector<1x8x1xf32>
      %c0_53 = arith.constant 0 : index
      %c0_54 = arith.constant 0 : index
      %c0_55 = arith.constant 0 : index
      %51 = vector.load %arg13[%c0_53, %c0_54, %c0_55] : memref<1x8x1xf32, #tpu.memory_space<vmem>>, vector<1x8x1xf32>
      tpu.vector_store %arg13[%c0_53, %c0_54, %c0_55], %50 {strides = array<i32>} : memref<1x8x1xf32, #tpu.memory_space<vmem>>, vector<1x8x1xf32>,
      %cst_56 = arith.constant 0.000000e+00 : f32
      %52 = vector.broadcast %cst_56 : f32 to vector<1x8x32xf32>
      %c0_57 = arith.constant 0 : index
      %c0_58 = arith.constant 0 : index
      %c0_59 = arith.constant 0 : index
      %53 = vector.load %arg14[%c0_57, %c0_58, %c0_59] : memref<1x8x32xf32, #tpu.memory_space<vmem>>, vector<1x8x32xf32>
      tpu.vector_store %arg14[%c0_57, %c0_58, %c0_59], %52 {strides = array<i32>} : memref<1x8x32xf32, #tpu.memory_space<vmem>>, vector<1x8x32xf32>,
    } else {
    }
    %c0 = arith.constant 0 : index
    %c0_1 = arith.constant 0 : index
    %c0_2 = arith.constant 0 : index
    %3 = vector.load %arg4[%c0, %c0_1, %c0_2] : memref<1x8x32xf32, #tpu.memory_space<vmem>>, vector<1x8x32xf32>
    %4 = vector.shape_cast %3 : vector<1x8x32xf32> to vector<8x32xf32>
    %c0_3 = arith.constant 0 : index
    %c0_4 = arith.constant 0 : index
    %5 = vector.load %arg8[%c0_3, %c0_4] : memref<32x64xf32, #tpu.memory_space<vmem>>, vector<32x64xf32>
    %cst = arith.constant dense<0.000000e+00> : vector<8x64xf32>
    %6 = tpu.matmul %4, %5, %cst {dimension_numbers = #tpu.dot_dimension_numbers<[1], [0], [0], [1], [0, 0, 1, 1], [], []>} : vector<8x32xf32>, vector<32x64xf32>, vector<8x64xf32> -> vector<8x64xf32>
    %c0_5 = arith.constant 0 : index
    %c0_6 = arith.constant 0 : index
    %7 = vector.load %arg9[%c0_5, %c0_6] : memref<1x64xf32, #tpu.memory_space<vmem>>, vector<1x64xf32>
    %8 = vector.broadcast %7 : vector<1x64xf32> to vector<8x64xf32>
    %9 = arith.addf %6, %8 : vector<8x64xf32>
    %10 = vector.shape_cast %9 : vector<8x64xf32> to vector<1x8x64xf32>
    %c0_7 = arith.constant 0 : index
    %c0_8 = arith.constant 0 : index
    %c0_9 = arith.constant 0 : index
    %11 = vector.load %arg11[%c0_7, %c0_8, %c0_9] : memref<1x8x64xf32, #tpu.memory_space<vmem>>, vector<1x8x64xf32>
    %cst_10 = arith.constant dense<0.000000e+00> : vector<1x8x8xf32>
    %12 = tpu.matmul %11, %10, %cst_10 {dimension_numbers = #tpu.dot_dimension_numbers<[2], [2], [1], [1], [0, 0, 0, 1, 1, 1], [0], [0]>} : vector<1x8x64xf32>, vector<1x8x64xf32>, vector<1x8x8xf32> -> vector<1x8x8xf32>
    %c0_11 = arith.constant 0 : index
    %c0_12 = arith.constant 0 : index
    %c0_13 = arith.constant 0 : index
    %13 = vector.load %arg12[%c0_11, %c0_12, %c0_13] : memref<1x8x1xf32, #tpu.memory_space<vmem>>, vector<1x8x1xf32>
    %cst_14 = arith.constant dense<0xFF800000> : vector<1x8xf32>
    %14 = vector.multi_reduction <maximumf>, %12, %cst_14 [2] : vector<1x8x8xf32> to vector<1x8xf32>
    %15 = vector.shape_cast %14 : vector<1x8xf32> to vector<1x8x1xf32>
    %16 = arith.maximumf %13, %15 : vector<1x8x1xf32>
    %17 = arith.subf %13, %16 : vector<1x8x1xf32>
    %18 = math.exp %17 : vector<1x8x1xf32>
    %19 = vector.broadcast %16 : vector<1x8x1xf32> to vector<1x8x8xf32>
    %20 = arith.subf %12, %19 : vector<1x8x8xf32>
    %21 = math.exp %20 : vector<1x8x8xf32>
    %c0_15 = arith.constant 0 : index
    %c0_16 = arith.constant 0 : index
    %c0_17 = arith.constant 0 : index
    %22 = vector.load %arg13[%c0_15, %c0_16, %c0_17] : memref<1x8x1xf32, #tpu.memory_space<vmem>>, vector<1x8x1xf32>
    %23 = arith.mulf %18, %22 : vector<1x8x1xf32>
    %cst_18 = arith.constant dense<0.000000e+00> : vector<1x8xf32>
    %24 = vector.multi_reduction <add>, %21, %cst_18 [2] : vector<1x8x8xf32> to vector<1x8xf32>
    %25 = vector.shape_cast %24 : vector<1x8xf32> to vector<1x8x1xf32>
    %26 = arith.addf %23, %25 : vector<1x8x1xf32>
    %c0_19 = arith.constant 0 : index
    %c0_20 = arith.constant 0 : index
    %c0_21 = arith.constant 0 : index
    %27 = vector.load %arg13[%c0_19, %c0_20, %c0_21] : memref<1x8x1xf32, #tpu.memory_space<vmem>>, vector<1x8x1xf32>
    tpu.vector_store %arg13[%c0_19, %c0_20, %c0_21], %26 {strides = array<i32>} : memref<1x8x1xf32, #tpu.memory_space<vmem>>, vector<1x8x1xf32>,
    %c0_22 = arith.constant 0 : index
    %c0_23 = arith.constant 0 : index
    %c0_24 = arith.constant 0 : index
    %28 = vector.load %arg5[%c0_22, %c0_23, %c0_24] : memref<1x8x32xf32, #tpu.memory_space<vmem>>, vector<1x8x32xf32>
    %cst_25 = arith.constant dense<0.000000e+00> : vector<1x8x32xf32>
    %29 = tpu.matmul %21, %28, %cst_25 {dimension_numbers = #tpu.dot_dimension_numbers<[2], [1], [1], [2], [0, 0, 0, 1, 1, 2], [0], [0]>} : vector<1x8x8xf32>, vector<1x8x32xf32>, vector<1x8x32xf32> -> vector<1x8x32xf32>
    %c0_26 = arith.constant 0 : index
    %c0_27 = arith.constant 0 : index
    %c0_28 = arith.constant 0 : index
    %30 = vector.load %arg14[%c0_26, %c0_27, %c0_28] : memref<1x8x32xf32, #tpu.memory_space<vmem>>, vector<1x8x32xf32>
    %31 = vector.broadcast %18 : vector<1x8x1xf32> to vector<1x8x32xf32>
    %32 = arith.mulf %31, %30 : vector<1x8x32xf32>
    %33 = arith.addf %32, %29 : vector<1x8x32xf32>
    %c0_29 = arith.constant 0 : index
    %c0_30 = arith.constant 0 : index
    %c0_31 = arith.constant 0 : index
    %34 = vector.load %arg14[%c0_29, %c0_30, %c0_31] : memref<1x8x32xf32, #tpu.memory_space<vmem>>, vector<1x8x32xf32>
    tpu.vector_store %arg14[%c0_29, %c0_30, %c0_31], %33 {strides = array<i32>} : memref<1x8x32xf32, #tpu.memory_space<vmem>>, vector<1x8x32xf32>,
    %c0_32 = arith.constant 0 : index
    %c0_33 = arith.constant 0 : index
    %c0_34 = arith.constant 0 : index
    %35 = vector.load %arg12[%c0_32, %c0_33, %c0_34] : memref<1x8x1xf32, #tpu.memory_space<vmem>>, vector<1x8x1xf32>
    tpu.vector_store %arg12[%c0_32, %c0_33, %c0_34], %16 {strides = array<i32>} : memref<1x8x1xf32, #tpu.memory_space<vmem>>, vector<1x8x1xf32>,
    %c0_i32_35 = arith.constant 0 : i32
    %36 = arith.cmpi eq, %arg1, %c0_i32_35 : i32
    %37 = arith.extui %36 : i1 to i32
    %c0_i32_36 = arith.constant 0 : i32
    %38 = arith.cmpi ne, %37, %c0_i32_36 : i32
    scf.if %38 {
      %c0_37 = arith.constant 0 : index
      %c0_38 = arith.constant 0 : index
      %c0_39 = arith.constant 0 : index
      %39 = vector.load %arg13[%c0_37, %c0_38, %c0_39] : memref<1x8x1xf32, #tpu.memory_space<vmem>>, vector<1x8x1xf32>
      %40 = tpu.reciprocal %39 : vector<1x8x1xf32> -> vector<1x8x1xf32>
      %c0_40 = arith.constant 0 : index
      %c0_41 = arith.constant 0 : index
      %c0_42 = arith.constant 0 : index
      %41 = vector.load %arg14[%c0_40, %c0_41, %c0_42] : memref<1x8x32xf32, #tpu.memory_space<vmem>>, vector<1x8x32xf32>
      %42 = vector.broadcast %40 : vector<1x8x1xf32> to vector<1x8x32xf32>
      %43 = arith.mulf %41, %42 : vector<1x8x32xf32>
      %c0_43 = arith.constant 0 : index
      %44 = memref.load %arg2[%c0_43] : memref<1xf32, #tpu.memory_space<smem>>
      %c0_44 = arith.constant 0 : index
      %c0_45 = arith.constant 0 : index
      %c0_46 = arith.constant 0 : index
      %45 = vector.load %arg3[%c0_44, %c0_45, %c0_46] : memref<1x8x32xf32, #tpu.memory_space<vmem>>, vector<1x8x32xf32>
      %46 = vector.broadcast %44 : f32 to vector<1x8x32xf32>
      %47 = arith.mulf %46, %45 : vector<1x8x32xf32>
      %48 = arith.addf %43, %47 : vector<1x8x32xf32>
      %c0_47 = arith.constant 0 : index
      %c0_48 = arith.constant 0 : index
      %c0_49 = arith.constant 0 : index
      %49 = vector.load %arg10[%c0_47, %c0_48, %c0_49] : memref<1x8x32xf32, #tpu.memory_space<vmem>>, vector<1x8x32xf32>
      tpu.vector_store %arg10[%c0_47, %c0_48, %c0_49], %48 {strides = array<i32>} : memref<1x8x32xf32, #tpu.memory_space<vmem>>, vector<1x8x32xf32>,
    } else {
    }
    return
  }
  func.func @transform_0(%arg0: i32, %arg1: i32) -> i32 {
    %c0_i32 = arith.constant 0 : i32
    %c0_i32_0 = arith.constant 0 : i32
    return %c0_i32 : i32
  }
  func.func @transform_1(%arg0: i32, %arg1: i32) -> (i32, i32, i32) {
    %c0_i32 = arith.constant 0 : i32
    %c0_i32_0 = arith.constant 0 : i32
    %c0_i32_1 = arith.constant 0 : i32
    return %arg0, %c0_i32, %c0_i32_0 : i32, i32, i32
  }
  func.func @transform_2(%arg0: i32, %arg1: i32) -> (i32, i32, i32) {
    %c0_i32 = arith.constant 0 : i32
    %c0_i32_0 = arith.constant 0 : i32
    return %arg0, %arg1, %c0_i32 : i32, i32, i32
  }
  func.func @transform_3(%arg0: i32, %arg1: i32) -> (i32, i32, i32) {
    %c0_i32 = arith.constant 0 : i32
    %c0_i32_0 = arith.constant 0 : i32
    return %arg0, %arg1, %c0_i32 : i32, i32, i32
  }
  func.func @transform_4(%arg0: i32, %arg1: i32) -> (i32, i32) {
    %c0_i32 = arith.constant 0 : i32
    %c0_i32_0 = arith.constant 0 : i32
    %c0_i32_1 = arith.constant 0 : i32
    return %c0_i32, %c0_i32_0 : i32, i32
  }
  func.func @transform_5(%arg0: i32, %arg1: i32) -> (i32, i32) {
    %c0_i32 = arith.constant 0 : i32
    %c0_i32_0 = arith.constant 0 : i32
    %c0_i32_1 = arith.constant 0 : i32
    return %c0_i32, %c0_i32_0 : i32, i32
  }
  func.func @transform_6(%arg0: i32, %arg1: i32) -> (i32, i32) {
    %c0_i32 = arith.constant 0 : i32
    %c0_i32_0 = arith.constant 0 : i32
    %c0_i32_1 = arith.constant 0 : i32
    return %c0_i32, %c0_i32_0 : i32, i32
  }
  func.func @transform_7(%arg0: i32, %arg1: i32) -> (i32, i32) {
    %c0_i32 = arith.constant 0 : i32
    %c0_i32_0 = arith.constant 0 : i32
    %c0_i32_1 = arith.constant 0 : i32
    return %c0_i32, %c0_i32_0 : i32, i32
  }
  func.func @transform_8(%arg0: i32, %arg1: i32) -> (i32, i32, i32) {
    %c0_i32 = arith.constant 0 : i32
    %c0_i32_0 = arith.constant 0 : i32
    %c0_i32_1 = arith.constant 0 : i32
    return %arg0, %c0_i32, %c0_i32_0 : i32, i32, i32
  }
}

</mosaic_0001>

<bundles_post_ra>
// kernel: tpu_custom_call.1
= control target key start
LH: loop header
LB: loop body
LE: loop exit
PB: predicated region body
PF: predicated region fallthrough
CT: control target
= control target key end

     0   :  { %s1712_s0 = inlined_call_operand.<no memory space> [shape: f32[1], index: 0, kind: input, shape index: {}]   ;;  %s1713_s1 = inlined_call_operand.hbm [shape: f32[2,8,32], index: 1, kind: input, shape index: {}]   ;;  %s1714_s2 = inlined_call_operand.hbm [shape: f32[2,8,32], index: 2, kind: input, shape index: {}]   ;;  %s1715_s3 = inlined_call_operand.hbm [shape: f32[2,8,32], index: 3, kind: input, shape index: {}]   ;;  %s1716_s4 = inlined_call_operand.hbm [shape: f32[32,64], index: 4, kind: input, shape index: {}]   ;;  %s1717_s5 = inlined_call_operand.vmem [shape: f32[1,64], index: 5, kind: input, shape index: {}]   ;;  %s1718_s6 = inlined_call_operand.hbm [shape: f32[32,64], index: 6, kind: input, shape index: {}]   ;;  %s1719_s7 = inlined_call_operand.vmem [shape: f32[1,64], index: 7, kind: input, shape index: {}]   ;;  %s1720_s8 = inlined_call_operand.hbm [shape: f32[2,8,32], index: 8, kind: output, shape index: {}]  }
   0x1   :  { %1737 = sst [smem:[#allocation27_spill]] %s1714_s2 }
   0x2   :  { %1738 = sst [smem:[#allocation28_spill]] %s1716_s4 }
   0x3   :  { %1739 = sst [smem:[#allocation29_spill]] %s1720_s8 }
   0x4   :  { %13 = sst [smem:[#allocation6]] %s1712_s0 }
   0x5   :  { %14 = vsyncpa [#allocation8], 0 }
   0x6   :  { %16 = vsyncpa [#allocation8 + $0x1], 0 }
   0x7   :  { %17 = vsyncpa [#allocation11], 0 }
   0x8   :  { %19 = vsyncpa [#allocation11 + $0x1], 0 }
   0x9   :  { %20 = vsyncpa [#allocation14], 0 }
   0xa   :  { %21 = vsyncpa [#allocation9], 0 }
   0xb   :  { %23 = vsyncpa [#allocation9 + $0x1], 0  ;;  %s1452_s29 = smov 0   ;;  %s1454_s30 = smov 0  }
   0xc   :  { %s1456_s9 = smov 0   ;;  %s1458_s10 = smov 0  }
   0xd   :  { %s1460_s11 = smov 0   ;;  %s1462_s12 = smov 0  }
   0xe LB: > { %1740 = sst [smem:[#allocation21_spill]] %s1370_s29  ;;  %s1483_s0 = sadd.s32 4294967295, %s1390_s12   ;;  %s1390_s12 = sphi %s1462_s12, %s29_s12   ;;  %s1386_s11 = sphi %s1460_s11, %s1774_s11   ;;  %s1382_s10 = sphi %s1458_s10, %s1773_s10   ;;  %s1378_s9 = sphi %s1456_s9, %s1777_s9   ;;  %s1374_s30 = sphi %s1454_s30, %s1776_s30   ;;  %s1370_s29 = sphi %s1452_s29, %s1775_s29  }
   0xf   : > { %1741 = sst [smem:[#allocation22_spill]] %s1386_s11  ;;  %s984_s13 = sadd.s32 4294967294, %s1390_s12  }
  0x10   : > { %1742 = sst [smem:[#allocation23_spill]] %s1390_s12  ;;  %p82_p0 = scmp.ne.s32.totalorder %s1374_s30, %s1370_s29 }
  0x11   : > { %p1729_p1 = scmp.eq.s32.totalorder %s1483_s0, 0  ;;  %p252_p3 = scmp.eq.s32.totalorder %s984_s13, 1 }
  0x12   : > { %p985_p5 = scmp.ge.s32.totalorder %s1390_s12, 1  ;;  %p259_p7 = scmp.lt.s32.totalorder %s1390_s12, 3 }
  0x13   : > { %p1492_p4 = por %p1729_p1, %p82_p0  ;;  %p1497_p6 = por %p252_p3, %p82_p0 }
  0x14   : > { %p1502_p8 = pnand %p985_p5, %p259_p7  ;;  %s1392_s17 = smov [#allocation13]  }
  0x15   : > { %s1743_s14 = scalar_select %p1492_p4, 1, 0 }
  0x16   : > { %s1744_s15 = scalar_select %p1497_p6, 1, 0 }
  0x17   : > { %s1746_s16 = scalar_select %p1502_p8, 1, 0 }
  0x18   : > { %1745 = sst [smem:[#allocation24_spill]] %s1744_s15  ;;  %s274_s18 = sshll.u32 %s1392_s17, 4  ;;  %s275_s18 = int_to_ptr.vmem [resolvable:$true] %s274_s18 }
  0x19   : > { %p1075_p9 = pneg %p1502_p8  ;;  %s41_s20 = sadd.s32 1, %s1386_s11 }
  0x1a   : > { %s1177_s21 = scalar_lea.vmem %s275_s18, 512  ;;  %p1185_p5 = scmp.lt.s32.totalorder %s275_s18, %s275_s18 }
  0x1b   : > { %p1511_p11 = pnand %p1075_p9, %p1729_p1  ;;  %p1178_p13 = scmp.ne.s32.totalorder %s275_s18, %s1177_s21 }
  0x1c   : > { %p1186_p7 = scmp.lt.s32.totalorder %s1177_s21, %s1177_s21 }
  0x1d   : > { %p1730_p12 = pneg %p1511_p11 }
  0x1e   : > { %p1187_p2 = por %p1186_p7, %p1185_p5 }
  0x1f   : > { %p1180_p0 = pnand %p1178_p13, %p1730_p12 }
  0x21   : > { %p1181_p3 = pneg %p1180_p0 }
  0x23   : > { %p1188_p10 = pnand %p1187_p2, %p1181_p3 }
  0x25   : > { %1191 = shalt.err (!%p1188_p10)
}
  0x26   : > { %s1721_s22 = smov 128   ;;  %s1722_s23 = smov 8  }
  0x27   : > { %s1748_s4 = sld [smem:[#allocation28_spill]]  ;;  %p43_p2 = scmp.ge.s32.totalorder %s41_s20, 2 }
  0x28   : > { %s69_s26 = sadd.s32 1, %s1378_s9  ;;  %p76_p9 = scmp.ne.s32.totalorder %s1378_s9, %s1374_s30 }
  0x29   : > { %p77_p10 = scmp.eq.s32.totalorder %s1390_s12, 0  ;;  %s1779_s20 = smov (%p43_p2, %s41_s20), 0 }
  0x2a   : > { %1749 = sst [smem:[#allocation25_spill]] %s1779_s20  ;;  %p1750_p0 = scmp.eq.s32.totalorder %s1483_s0, 1 }
  0x2b   : > { %p78_p13 = por %p77_p10, %p76_p9  ;;  %s66_s28 = ssub.s32 %s1386_s11, %s1779_s20 }
  0x2c   : > { %p1537_p3 = por %p1750_p0, %p76_p9  ;;  %p1098_p5 = scmp.lt.s32.totalorder %s1390_s12, 2 }
  0x2d   : > { %1078 = dma.hbm_to_vmem [thread:$0]  (!%p1511_p11), %s1748_s4, 512, %s275_s18, [#allocation14], %s1721_s22, %s1721_s22, %s1722_s23  }
  0x2e   : > { %s1751_s27 = scalar_select %p1537_p3, 1, 0 }
  0x2f   : > { %p67_p7 = scmp.eq.s32.totalorder %s66_s28, 0  ;;  %s1723_s13 = sand.u32 1, %s1378_s9  }
  0x30   : > { %s1547_s17 = sshll.u32 %s1723_s13, 3  ;;  %s1550_s18 = sshll.u32 %s1386_s11, 7 }
  0x31   : > { %s1553_s21 = scalar_select %p67_p7, %s1378_s9, %s69_s26  }
  0x32   : > { %p1555_p2 = pnand %p1098_p5, %p78_p13  ;;  %s325_s25 = sand.u32 1, %s1390_s12  }
  0x33   : > { %1752 = sst [smem:[#allocation26_spill]] %s1553_s21  ;;  %s329_s4 = scalar_lea.vmem [#allocation10], %s1547_s17 }
  0x34   : > { %s1754_s2 = sld [smem:[#allocation27_spill]]  ;;  %s337_s13 = sshll.u32 %s329_s4, 4  ;;  %s338_s13 = int_to_ptr.vmem [resolvable:$true] %s337_s13 }
  0x35   : > { %s1395_s20 = smov [#allocation15]   ;;  %s1565_s15 = scalar_lea.sflag [#allocation11], %s325_s25 }
  0x36   : > { %s290_s11 = sshll.u32 %s1395_s20, 4  ;;  %p1731_p9 = pneg %p1555_p2  ;;  %s291_s11 = int_to_ptr.vmem [resolvable:$true] %s290_s11 }
  0x37   : > { %s1205_s26 = scalar_lea.vmem %s338_s13, 128  ;;  %s1396_s21 = smov [#allocation10]  }
  0x38   : > { %p1206_p10 = scmp.ne.s32.totalorder %s338_s13, %s1205_s26  ;;  %s1210_s12 = sshll.u32 %s1396_s21, 4  ;;  %s1211_s12 = int_to_ptr.vmem [resolvable:$false] %s1210_s12 }
  0x39   : > { %s1212_s22 = scalar_lea.vmem %s1211_s12, 256  ;;  %p1213_p5 = scmp.lt.s32.totalorder %s338_s13, %s1211_s12 }
  0x3a   : > { %s335_s28 = scalar_lea.hbm %s1754_s2, %s1550_s18  ;;  %p1208_p13 = pnand %p1206_p10, %p1731_p9 }
  0x3b   : > { %p1214_p7 = scmp.lt.s32.totalorder %s1212_s22, %s1205_s26 }
  0x3c   : > { %p1209_p0 = pneg %p1208_p13 }
  0x3d   : > { %p1215_p1 = por %p1214_p7, %p1213_p5 }
  0x3f   : > { %p1216_p12 = pnand %p1215_p1, %p1209_p0 }
  0x41   : > { %1219 = shalt.err (!%p1216_p12)
}
  0x42   : > { %1088 = dma.hbm_to_vmem [thread:$0]  (!%p1555_p2), %s335_s28, 128, %s338_s13, %s1565_s15  }
  0x43   : > { %s1231_s4 = scalar_lea.vmem %s291_s11, 512  ;;  %p1755_p10 = pneg %p1511_p11 }
  0x44   : > { %p1232_p6 = scmp.ne.s32.totalorder %s291_s11, %s1231_s4  ;;  %p1239_p3 = scmp.lt.s32.totalorder %s291_s11, %s291_s11 }
  0x45   : > { %p1240_p4 = scmp.lt.s32.totalorder %s1231_s4, %s1231_s4 }
  0x46   : > { %p1234_p13 = pnand %p1232_p6, %p1755_p10 }
  0x47   : > { %p1241_p8 = por %p1240_p4, %p1239_p3 }
  0x48   : > { %p1235_p9 = pneg %p1234_p13 }
  0x4a   : > { %p1242_p5 = pnand %p1241_p8, %p1235_p9 }
  0x4c   : > { %1245 = shalt.err (!%p1242_p5)
}
  0x4d   : > { %s1756_s12 = smov 8   ;;  %s1757_s20 = smov 128  }
  0x4e   : > { %1081 = dma.hbm_to_vmem [thread:$0]  (!%p1511_p11), %s1718_s6, 512, %s291_s11, [#allocation14], %s1757_s20, %s1757_s20, %s1756_s12  }
  0x4f   : > { %s316_s28 = scalar_lea.hbm %s1713_s1, %s1550_s18  ;;  %s311_s26 = scalar_lea.vmem [#allocation7], %s1547_s17 }
  0x50   : > { %s318_s22 = sshll.u32 %s311_s26, 4  ;;  %s354_s2 = scalar_lea.hbm %s1715_s3, %s1550_s18  ;;  %s319_s22 = int_to_ptr.vmem [resolvable:$true] %s318_s22 }
  0x51   : > { %s1758_s29 = sand.u32 1, %s1378_s9   ;;  %s1259_s23 = scalar_lea.vmem %s319_s22, 128 }
  0x52   : > { %s308_s8 = scalar_lea.sflag [#allocation8], %s1758_s29  ;;  %p1260_p1 = scmp.ne.s32.totalorder %s319_s22, %s1259_s23 }
  0x53   : > { %p1759_p4 = pneg %p1555_p2  ;;  %s1397_s11 = smov [#allocation7]  }
  0x54   : > { %s1264_s12 = sshll.u32 %s1397_s11, 4  ;;  %s1265_s12 = int_to_ptr.vmem [resolvable:$false] %s1264_s12 }
  0x55   : > { %p1262_p6 = pnand %p1260_p1, %p1759_p4  ;;  %s1266_s20 = scalar_lea.vmem %s1265_s12, 256 }
  0x56   : > { %p1267_p11 = scmp.lt.s32.totalorder %s319_s22, %s1265_s12  ;;  %p1268_p12 = scmp.lt.s32.totalorder %s1266_s20, %s1259_s23 }
  0x57   : > { %p1263_p8 = pneg %p1262_p6 }
  0x58   : > { %p1269_p3 = por %p1268_p12, %p1267_p11 }
  0x5a   : > { %p1270_p9 = pnand %p1269_p3, %p1263_p8 }
  0x5c   : > { %1273 = shalt.err (!%p1270_p9)
}
  0x5d   : > { %1085 = dma.hbm_to_vmem [thread:$0]  (!%p1555_p2), %s316_s28, 128, %s319_s22, %s308_s8  }
  0x5e   : > { %s348_s29 = scalar_lea.vmem [#allocation12], %s1547_s17  ;;  %p1760_p7 = pmov %p1759_p4 }
  0x5f   : > { %s356_s21 = sshll.u32 %s348_s29, 4  ;;  %s1398_s25 = smov [#allocation12]   ;;  %s357_s21 = int_to_ptr.vmem [resolvable:$true] %s356_s21 }
  0x60   : > { %s1287_s13 = scalar_lea.vmem %s357_s21, 128  ;;  %s1292_s26 = sshll.u32 %s1398_s25, 4  ;;  %s1293_s26 = int_to_ptr.vmem [resolvable:$false] %s1292_s26 }
  0x61   : > { %p1288_p0 = scmp.ne.s32.totalorder %s357_s21, %s1287_s13  ;;  %s1294_s19 = scalar_lea.vmem %s1293_s26, 256 }
  0x62   : > { %p1295_p5 = scmp.lt.s32.totalorder %s357_s21, %s1293_s26  ;;  %p1296_p1 = scmp.lt.s32.totalorder %s1294_s19, %s1287_s13 }
  0x63   : > { %p1290_p10 = pnand %p1288_p0, %p1760_p7 }
  0x64   : > { %p1297_p4 = por %p1296_p1, %p1295_p5 }
  0x65   : > { %p1291_p13 = pneg %p1290_p10 }
  0x67   : > { %p1298_p6 = pnand %p1297_p4, %p1291_p13 }
  0x69   : > { %1301 = shalt.err (!%p1298_p6)
}
  0x6a   : > { %1091 = dma.hbm_to_vmem [thread:$0]  (!%p1555_p2), %s354_s2, 128, %s357_s21, %s1565_s15  }
  0x6b   : > { %p1761_p8 = scmp.ne.s32.totalorder %s1746_s16, 0 }
  0x6c   : > { %s1617_s28 = sand.u32 (!%p1761_p8), 1, %s1374_s30   ;;  %p1762_p11 = scmp.ne.s32.totalorder (!%p1761_p8), %s1743_s14, 0 }
  0x6d   : > { %365 = sbr.rel (%p1761_p8) target bundleno = 1114 (0x45a), region = 52  ;;  %s1620_s22 = sshll.u32 (!%p1761_p8), %s1617_s28, 3 }
  0x6e   : > { %s368_s24 = scalar_lea.sflag (!%p1761_p8), [#allocation8], %s1617_s28  ;;  %s371_s4 = scalar_lea.vmem (!%p1761_p8), [#allocation7], %s1620_s22 }
  0x72   : > { %1353 = dma.done.wait (%p1762_p11), %s368_s24, 128  }
  0x73   : > { %1355 = vsyncadd (%p1762_p11), %s368_s24, 4294967168  ;;  %s376_s2 = sand.u32 1, %s1483_s0   ;;  %s380_s16 = scalar_lea.vmem [#allocation10], %s1620_s22 }
  0x74   : > { %s377_s15 = scalar_lea.sflag [#allocation11], %s376_s2 }
  0x75   : > { %1357 = dma.done.wait (%p1762_p11), %s377_s15, 256  }
  0x76   : > { %1359 = vsyncadd (%p1762_p11), %s377_s15, 4294967040  ;;  %s389_s18 = scalar_lea.vmem [#allocation12], %s1620_s22  ;;  %p1763_p2 = scmp.eq.s32.totalorder %s1483_s0, 0 }
  0x78   : > { %1361 = dma.done.wait (%p1763_p2), [#allocation14], 1024   ;;  %p1764_p12 = pmov %p1763_p2 }
  0x79   : > { %vm456_vm0 = vcmask 261120   ;;  %v1399_v0 = vmov 0.0   ;;  %vm1400_vm1 = vmmov 0   ;;  %v448_v1 = vld [vmem:[#allocation13 + $0x18] sm:$0xff]  ;;  %v447_v2 = vld [vmem:[#allocation13 + $0x10] sm:$0xff]  ;;  %v446_v5 = vld [vmem:[#allocation13 + $0x8] sm:$0xff] }
  0x7a   : > { %1363 = vsyncadd (%p1764_p12), [#allocation14], 4294966272  ;;  %1027 = vmatprep.subr.mxu0 %v1399_v0  ;;  %1038 = vmatprep.subr.mxu1 %v1399_v0  ;;  %535 = vst.msk [vmem:[#allocation5] sm:$0xff] %vm456_vm0, %v1399_v0  ;;  %v540_v3 = vld [vmem:[#allocation15 + $0x18] sm:$0xff]  ;;  %v539_v4 = vld [vmem:[#allocation15 + $0x10] sm:$0xff]  ;;  %vm530_vm2 = vcmask 523264  }
  0x7b   : > { %1035 = vmatprep.mubr.msk.f32.mxu0 %vm1400_vm1, %v1399_v0  ;;  %1046 = vmatprep.mubr.msk.f32.mxu1 %vm1400_vm1, %v1399_v0  ;;  %v538_v6 = vld [vmem:[#allocation15 + $0x8] sm:$0xff]  ;;  %v445_v7 = vld [vmem:[#allocation13] sm:$0xff]  ;;  %v1644_v9 = vld [vmem:[%s371_s4] sm:$0xff]  ;;  %vm532_vm3 = vcmask 7168   ;;  %v1401_v20 = vmov -inf   ;;  %vm701_vm4 = vcmask 64512  }
  0x7c   : > { %1028 = vmatpush3.msra.mxu0 %v448_v1  ;;  %1039 = vmatpush3.msra.mxu1 %v540_v3  ;;  %v537_v8 = vld [vmem:[#allocation15] sm:$0xff]  ;;  %v1002_v11 = vld [vmem:[%s1717_s5] ss:$0 sm:$0xff]  ;;  %533 = vst.msk [vmem:[#allocation3] sm:$0xff] %vm532_vm3, %v1401_v20  ;;  %534 = vst.msk [vmem:[#allocation4] sm:$0xff] %vm532_vm3, %v1399_v0  ;;  %v1402_v24 = vmov 0  }
  0x7d   : > { %1029 = vmatprep.subr.mxu0 %v1399_v0  ;;  %1040 = vmatprep.subr.mxu1 %v1399_v0  ;;  %v536_v10 = vld [vmem:[%s380_s16] sm:$0xff]  ;;  %v1004_v12 = vld [vmem:[%s1719_s7] ss:$0 sm:$0xff]  ;;  %s821_s12 = sld [smem:[#allocation6]]  ;;  %s1010_s20 = sshll.u32 %s1382_s10, 7 }
  0x7e   : > { %1030 = vmatpush3.msra.mxu0 %v447_v2  ;;  %1041 = vmatpush3.msra.mxu1 %v539_v4  ;;  %v725_v29 = vld [vmem:[%s389_s18] sm:$0xff]  ;;  %s439_s29 = scalar_lea.vmem [#allocation16], %s1620_s22  ;;  %s1765_s26 = sld [smem:[#allocation29_spill]] }
  0x7f   : > { %1031 = vmatprep.subr.mxu0 %v1399_v0  ;;  %1042 = vmatprep.subr.mxu1 %v1399_v0  ;;  %s841_s21 = sshll.u32 %s439_s29, 4  ;;  %s828_s8 = scalar_lea.sflag [#allocation9], %s1617_s28  ;;  %s842_s21 = int_to_ptr.vmem [resolvable:$true] %s841_s21 }
  0x80   : > { %1032 = vmatpush3.msra.mxu0 %v446_v5  ;;  %1043 = vmatpush3.msra.mxu1 %v538_v6  ;;  %s1302_s17 = scalar_lea.vmem %s842_s21, 128  ;;  %p1766_p9 = scmp.ne.s32.totalorder %s1751_s27, 0 }
  0x81   : > { %1033 = vmatprep.subr.mxu0 %v1399_v0  ;;  %1044 = vmatprep.subr.mxu1 %v1399_v0  ;;  %v799_v43 = vld [vmem:[#allocation5] sm:$0xff]  ;;  %p1303_p3 = scmp.ne.s32.totalorder %s842_s21, %s1302_s17  ;;  %s1403_s24 = smov [#allocation16]  }
  0x82   : > { %1034 = vmatpush3.msra.mxu0 %v445_v7  ;;  %1045 = vmatpush3.msra.mxu1 %v537_v8  ;;  %s1306_s4 = sshll.u32 %s1403_s24, 4  ;;  %s1307_s4 = int_to_ptr.vmem [resolvable:$false] %s1306_s4 }
  0x83   : > { %1036 = vmatmul.mubr.msk.f32.vlgmr.msra.gmra.mxu0 %vm456_vm0, %v1644_v9  ;;  %1047 = vmatmul.mubr.msk.f32.vlgmr.msra.gmra.mxu1 %vm456_vm0, %v536_v10  ;;  %v700_v25 = vld [vmem:[#allocation3] sm:$0xff]  ;;  %v717_v37 = vld [vmem:[#allocation4] sm:$0xff]  ;;  %v823_v49 = vstv %s821_s12  ;;  %p1304_p0 = pnand %p1303_p3, %p1766_p9  ;;  %s1308_s10 = scalar_lea.vmem %s1307_s4, 256 }
  0x84   : > { %1049 = vmatprep.subr.mxu0 %v1399_v0  ;;  %1051 = vmatprep.mubr.msk.f32.mxu0 %vm1400_vm1, %v1399_v0  ;;  %v824_v50 = vmul.f32 %v823_v49, %v1644_v9  ;;  %s839_s19 = scalar_lea.hbm %s1765_s26, %s1010_s20  ;;  %p1309_p10 = scmp.lt.s32.totalorder %s842_s21, %s1307_s4 }
  0x85   : > { %1054 = vmatprep.subr.mxu1 %v1399_v0  ;;  %1056 = vmatprep.mubr.msk.f32.mxu1 %vm1400_vm1, %v1399_v0  ;;  %p1305_p7 = pneg %p1304_p0  ;;  %p1310_p13 = scmp.lt.s32.totalorder %s1308_s10, %s1302_s17 }
  0x86   : > { %1158 = vset.pattern.permute.xlu0 %v1402_v24  ;;  %1159 = vset.pattern.permute.xlu1 %v1402_v24 }
  0x87   : > { %1055 = vmatpush3.msra.mxu1 %v725_v29  ;;  %p1311_p5 = por %p1310_p13, %p1309_p10 }
  0x89   : > { %p1312_p1 = pnand %p1311_p5, %p1305_p7 }
 0x143   : > { %v526_v13 = vpop.f32.mrf.mxu0  ;;  %v618_v14 = vpop.f32.mrf.mxu1 }
 0x144   : > { %v527_v15 = vadd.f32 %v1002_v11, %v526_v13  ;;  %v619_v16 = vadd.f32 %v1004_v12, %v618_v14 }
 0x145   : > { %v1037_v17 = vpop.f32.mrf.mxu0  ;;  %v1048_v18 = vpop.f32.mrf.mxu1 }
 0x146   : > { %531 = vst.msk [vmem:[#allocation2] sm:$0xff] %vm530_vm2, %v527_v15  ;;  %1050 = vmatpush3.xpose.msk.msra.mxu0 %vm530_vm2, %v619_v16 }
 0x14d   : > { %v622_v19 = vld [vmem:[#allocation2] sm:$0xff] }
 0x14e   : > { %1052 = vmatmul.mubr.msk.f32.vlgmr.msra.gmra.mxu0 %vm530_vm2, %v622_v19 }
 0x20e   : > { %v696_v21 = vpop.f32.mrf.mxu0 }
 0x20f   : > { %v702_v22 = vsel %vm701_vm4, %v696_v21, -inf }
 0x210   : > { %703 = vmax.xlane.f32.xlu0 %v702_v22  ;;  %v1053_v23 = vpop.f32.mrf.mxu0 }
 0x299   : > { %v704_v26 = vpop.xlane.xlu0 %703 }
 0x29a   : > { %v705_v27 = vmax.f32 %v700_v25, %v704_v26 }
 0x29c   : > { %v706_v28 = vsub.f32 %v700_v25, %v705_v27  ;;  %808 = vst.msk [vmem:[#allocation3] sm:$0xff] %vm532_vm3, %v705_v27  ;;  %711 = vperm.xlu0 %1158, %v705_v27  }
 0x29e   : > { %v707_v34 = vmul.f32 1.442695, %v706_v28 }
 0x317   : > { %v712_v30 = vpop.permute.xlu0 %711 }
 0x318   : > { %v714_v31 = vsub.f32 %v696_v21, %v712_v30 }
 0x31a   : > { %v715_v32 = vmul.f32 1.442695, %v714_v31 }
 0x31c   : > { %1160 = vpow2.f32 %v715_v32 }
 0x31d   : > { %1162 = vpow2.f32 %v707_v34 }
 0x329   : > { %v1161_v33 = vpop.eup %1160 }
 0x32a   : > { %1057 = vmatmul.mubr.msk.f32.vlgmr.msra.gmra.mxu1 %vm701_vm4, %v1161_v33  ;;  %v719_v35 = vsel %vm701_vm4, %v1161_v33, 0.0  ;;  %v1163_v36 = vpop.eup %1162 }
 0x32b   : > { %720 = vadd.xlane.f32.xlu1 %v719_v35  ;;  %v718_v38 = vmul.f32 %v1163_v36, %v717_v37 }
 0x33c   : > { %802 = vperm.xlu1 %1159, %v1163_v36  }
 0x3b4   : > { %v721_v39 = vpop.xlane.xlu1 %720 }
 0x3b5   : > { %v722_v40 = vadd.f32 %v721_v39, %v718_v38 }
 0x3b7   : > { %724 = vst.msk [vmem:[#allocation4] sm:$0xff] %vm532_vm3, %v722_v40 }
 0x3b8   : > { %v803_v44 = vpop.permute.xlu1 %802 }
 0x3b9   : > { %v805_v45 = vmul.f32 %v803_v44, %v799_v43 }
 0x3be   : > { %v812_v41 = vld [vmem:[#allocation4] sm:$0xff] }
 0x3bf   : > { %1164 = vrcp.f32 %v812_v41 }
 0x3cc   : > { %v1165_v42 = vpop.eup %1164 }
 0x3cd   : > { %817 = vperm.xlu1 %1159, %v1165_v42  }
 0x3ea   : > { %v795_v46 = vpop.f32.mrf.mxu1 }
 0x3eb   : > { %v806_v47 = vadd.f32 %v805_v45, %v795_v46 }
 0x3ec   : > { %v1058_v48 = vpop.f32.mrf.mxu1 }
 0x3ed   : > { %807 = vst.msk [vmem:[#allocation5] sm:$0xff] %vm456_vm0, %v806_v47 }
 0x3f4   : > { %v814_v51 = vld [vmem:[#allocation5] sm:$0xff] }
 0x448   : > { %v818_v52 = vpop.permute.xlu1 %817 }
 0x449   : > { %v820_v53 = vmul.f32 %v818_v52, %v814_v51 }
 0x44b   : > { %v825_v54 = vadd.f32 %v824_v50, %v820_v53 }
 0x44d   : > { %826 = vst.msk [vmem:[%s439_s29] sm:$0xff] %vm456_vm0, %v825_v54 }
 0x44e   : > { %1315 = shalt.err (!%p1312_p1)
}
 0x44f   : > { %s1316_s22 = scalar_lea.hbm %s839_s19, 128  ;;  %s1320_s15 = scalar_lea.hbm %s1765_s26, 256 }
 0x450   : > { %p1317_p4 = scmp.ne.s32.totalorder %s839_s19, %s1316_s22  ;;  %p1321_p11 = scmp.lt.s32.totalorder %s839_s19, %s1765_s26 }
 0x451   : > { %p1322_p2 = scmp.lt.s32.totalorder %s1320_s15, %s1316_s22 }
 0x452   : > { %p1318_p6 = pnand %p1317_p4, %p1766_p9 }
 0x453   : > { %p1323_p12 = por %p1322_p2, %p1321_p11 }
 0x454   : > { %p1319_p8 = pneg %p1318_p6 }
 0x456   : > { %p1324_p3 = pnand %p1323_p12, %p1319_p8 }
 0x458   : > { %1327 = shalt.err (!%p1324_p3)
}
 0x459   : > { %1073 = dma.vmem_to_hbm [thread:$0]  (%p1766_p9), %s842_s21, 128, %s839_s19, %s828_s8  }
 0x45a PF: > { %s1767_s0 = sld [smem:[#allocation21_spill]] }
 0x45b   : > { %s1768_s14 = sld [smem:[#allocation24_spill]] }
 0x45c   : > { %s1769_s23 = sld [smem:[#allocation23_spill]] }
 0x460   : > { %s853_s11 = sand.u32 1, %s1767_s0  }
 0x461   : > { %p1770_p0 = scmp.ne.s32.totalorder %s1768_s14, 0  ;;  %s854_s12 = scalar_lea.sflag [#allocation9], %s853_s11 }
 0x462   : > { %p1771_p7 = scmp.ge.s32.totalorder %s1769_s23, 2 }
 0x464   : > { %p1093_p10 = pnand %p1771_p7, %p1770_p0 }
 0x466   : > { %p1094_p13 = pneg %p1093_p10 }
 0x468   : > { %1365 = dma.done.wait (%p1094_p13), %s854_s12, 128  }
 0x469   : > { %1367 = vsyncadd (%p1094_p13), %s854_s12, 4294967168  ;;  %s29_s12 = sadd.s32 1, %s1769_s23   ;;  %s1772_s20 = sld [smem:[#allocation26_spill]] }
 0x46a   : > { %p26_p5 = scmp.ge.s32.totalorder %s29_s12, 4   ;;  %s1773_s10 = sld [smem:[#allocation22_spill]] }
 0x46b   : > { %s1774_s11 = sld [smem:[#allocation25_spill]]  ;;  %s1775_s29 = smov %s1374_s30 }
 0x46c   : > { %s1776_s30 = smov %s1378_s9  ;;  %28 = sbr.rel (!%p26_p5) target bundleno = 14 (0xe), region = 137 }
 0x46f   : > { %s1777_s9 = smov %s1772_s20 }
 0x471   :  { %859 = vsyncpa [#allocation8], 1 }
 0x472   :  { %861 = vsyncpa [#allocation8 + $0x1], 1 }
 0x473   :  { %862 = vsyncpa [#allocation11], 1 }
 0x474   :  { %864 = vsyncpa [#allocation11 + $0x1], 1 }
 0x475   :  { %865 = vsyncpa [#allocation14], 1 }
 0x476   :  { %866 = vsyncpa [#allocation9], 1 }
 0x477   :  { %868 = vsyncpa [#allocation9 + $0x1], 1 }

</bundles_post_ra>
